<compile_context>
chip_gen: v6e
topology: v6e:2x2x1
jax: 0.10.0
libtpu: 0.0.40
codegen_flags: <defaults>
</compile_context>

<pallas_src>
import functools

import jax
import jax.numpy as jnp
from jax.experimental import pallas as pl
from jax.experimental.pallas import tpu as pltpu

K_IN = 784    # fc1 in_features
H = 256       # fc1 out_features / fc2 in_features
N_OUT = 10    # fc2 out_features

MAX_TILE_B = 4096               # keeps double-buffered f32 x block inside v7x's 64 MiB VMEM
VMEM_CAP_BYTES = 56 * 1024 * 1024


def mlp_kernel(x_ref, w1_ref, b1_ref, w2_ref, b2_ref, o_ref):
    # fc1: cast streamed f32 activations to bf16 at the MXU input,
    # accumulate in f32, add f32 bias, ReLU.
    x = x_ref[...].astype(jnp.bfloat16)
    h = jnp.dot(x, w1_ref[...], preferred_element_type=jnp.float32)
    h = jnp.maximum(h + b1_ref[...], 0.0)
    # fc2: bf16 MXU inputs, f32 accumulation, f32 bias.
    out = jnp.dot(h.astype(jnp.bfloat16), w2_ref[...],
                  preferred_element_type=jnp.float32)
    o_ref[...] = (out + b2_ref[...]).astype(o_ref.dtype)


def _round_up(x, m):
    return ((x + m - 1) // m) * m


def prepare_params(w1, b1, w2, b2):
    """One-time parameter conversion (hoisted out of the per-call path).

    w1: (784, 256), w2: (256, 10) -- already transposed from torch's (out, in).
    Returns bf16 weights and f32 row-vector biases ready for mnist_simple_mlp.
    """
    return (w1.astype(jnp.bfloat16),
            b1.reshape(1, H).astype(jnp.float32),
            w2.astype(jnp.bfloat16),
            b2.reshape(1, N_OUT).astype(jnp.float32))


@functools.partial(jax.jit, static_argnames=("tile_b",))
def mnist_simple_mlp(x, w1_bf16, b1_row, w2_bf16, b2_row, *, tile_b=2048):
    """Forward pass: relu(x @ w1 + b1) @ w2 + b2.

    x: (B, 784) f32 (unpadded; bf16 cast happens inside the kernel).
    Params as produced by prepare_params(). Returns (B, 10) f32.
    """
    B = x.shape[0]
    tile_b = min(tile_b, MAX_TILE_B)

    # >= 2 grid steps so v7x's two TensorCores both run; even split of B across
    # steps minimizes zero-row padding at unlucky batch sizes.
    num_steps = max(2, pl.cdiv(B, tile_b))
    TB = _round_up(pl.cdiv(B, num_steps), 8)
    B_pad = num_steps * TB

    xp = x if B_pad == B else jnp.pad(x, ((0, B_pad - B), (0, 0)))

    # VMEM budget: double-buffered x / out blocks + in-kernel temporaries
    # (lane-padded estimates) + resident weights; clamped below v7x's 64 MiB.
    per_row = (2 * 896 * 4          # 2x f32 x block (784 lane-padded to 896)
               + 2 * 128 * 4        # 2x f32 out block (10 lane-padded to 128)
               + 896 * 2            # in-kernel bf16 x copy
               + 256 * 4 + 256 * 2  # f32 h + bf16 h
               + 128 * 4)           # f32 out temp
    vmem_bytes = TB * per_row + 4 * 1024 * 1024   # + weights / biases / slack
    vmem_limit = int(min(max(vmem_bytes, 32 * 1024 * 1024), VMEM_CAP_BYTES))

    out = pl.pallas_call(
        mlp_kernel,
        out_shape=jax.ShapeDtypeStruct((B_pad, N_OUT), jnp.float32),
        grid=(num_steps,),
        in_specs=[
            # Activations: streamed along the batch grid axis (auto double-buffered).
            pl.BlockSpec((TB, K_IN), lambda i: (i, 0)),
            # Weights / biases: constant index map -> fetched once, kept resident.
            pl.BlockSpec((K_IN, H), lambda i: (0, 0)),
            pl.BlockSpec((1, H), lambda i: (0, 0)),
            pl.BlockSpec((H, N_OUT), lambda i: (0, 0)),
            pl.BlockSpec((1, N_OUT), lambda i: (0, 0)),
        ],
        out_specs=pl.BlockSpec((TB, N_OUT), lambda i: (i, 0)),
        compiler_params=pltpu.CompilerParams(
            dimension_semantics=("parallel",),
            vmem_limit_bytes=vmem_limit,
        ),
    )(xp, w1_bf16, b1_row, w2_bf16, b2_row)

    return out if B_pad == B else out[:B]


def init_params(key):
    """Deterministic init mirroring nn.Linear default (uniform +-1/sqrt(fan_in))."""
    k1, k2, k3, k4 = jax.random.split(key, 4)
    bound1 = 1.0 / jnp.sqrt(784.0)
    bound2 = 1.0 / jnp.sqrt(256.0)
    # Stored directly in (in, out) layout (i.e. torch weight transposed).
    w1 = jax.random.uniform(k1, (784, 256), jnp.float32, -bound1, bound1)
    b1 = jax.random.uniform(k2, (256,), jnp.float32, -bound1, bound1)
    w2 = jax.random.uniform(k3, (256, 10), jnp.float32, -bound2, bound2)
    b2 = jax.random.uniform(k4, (10,), jnp.float32, -bound2, bound2)
    return w1, b1, w2, b2


def reference_forward_f32(x, w1, b1, w2, b2):
    h = jnp.maximum(x @ w1 + b1, 0.0)
    return h @ w2 + b2


def reference_forward_bf16(x, w1, b1, w2, b2):
    # Mirrors the kernel's numerics: bf16 matmul inputs, f32 accumulation.
    h = jnp.dot(x.astype(jnp.bfloat16), w1.astype(jnp.bfloat16),
                preferred_element_type=jnp.float32)
    h = jnp.maximum(h + b1, 0.0)
    out = jnp.dot(h.astype(jnp.bfloat16), w2.astype(jnp.bfloat16),
                  preferred_element_type=jnp.float32)
    return out + b2


if __name__ == "__main__":
    key = jax.random.PRNGKey(0)
    kx, kp = jax.random.split(key)
    batch = 8
    x = jax.random.normal(kx, (batch, 784), jnp.float32)
    w1, b1, w2, b2 = init_params(kp)

    # Parameter conversion happens once, outside the per-call path.
    params = prepare_params(w1, b1, w2, b2)

    out = mnist_simple_mlp(x, *params)
    out = jax.block_until_ready(out)

    ref32 = reference_forward_f32(x, w1, b1, w2, b2)
    ref16 = reference_forward_bf16(x, w1, b1, w2, b2)

    assert out.shape == (batch, 10)
    # Tight check against a reference with matching bf16-input numerics.
    assert jnp.allclose(out, ref16, atol=1e-3, rtol=1e-3)
    # Loose check against the full-f32 reference (bf16 inputs -> ~1e-2 error).
    assert jnp.allclose(out, ref32, atol=5e-2, rtol=5e-2)
    print("KERNEL_OK")
</pallas_src>

<mosaic_0001>
module attributes {stable_mosaic.version = 11 : i64} {
  func.func @mlp_kernel(%arg0: i32, %arg1: memref<8x784xf32, #tpu.memory_space<vmem>>, %arg2: memref<784x256xbf16, #tpu.memory_space<vmem>>, %arg3: memref<1x256xf32, #tpu.memory_space<vmem>>, %arg4: memref<256x10xbf16, #tpu.memory_space<vmem>>, %arg5: memref<1x10xf32, #tpu.memory_space<vmem>>, %arg6: memref<8x10xf32, #tpu.memory_space<vmem>>) attributes {dimension_semantics = [#tpu.dimension_semantics<parallel>], iteration_bounds = array<i64: 2>, scalar_prefetch = 0 : i64, scratch_operands = 0 : i64, tpu.core_type = #tpu.core_type<tc>, window_params = [{transform_indices = @transform_0, window_bounds = array<i64: 8, 784>}, {pipeline_mode = #tpu.pipeline_mode<synchronous>, transform_indices = @transform_1, window_bounds = array<i64: 784, 256>}, {pipeline_mode = #tpu.pipeline_mode<synchronous>, transform_indices = @transform_2, window_bounds = array<i64: 1, 256>}, {pipeline_mode = #tpu.pipeline_mode<synchronous>, transform_indices = @transform_3, window_bounds = array<i64: 256, 10>}, {pipeline_mode = #tpu.pipeline_mode<synchronous>, transform_indices = @transform_4, window_bounds = array<i64: 1, 10>}, {transform_indices = @transform_5, window_bounds = array<i64: 8, 10>}]} {
    %c0 = arith.constant 0 : index
    %c0_0 = arith.constant 0 : index
    %0 = vector.load %arg1[%c0, %c0_0] : memref<8x784xf32, #tpu.memory_space<vmem>>, vector<8x784xf32>
    %1 = arith.truncf %0 : vector<8x784xf32> to vector<8x784xbf16>
    %c0_1 = arith.constant 0 : index
    %c0_2 = arith.constant 0 : index
    %2 = vector.load %arg2[%c0_1, %c0_2] : memref<784x256xbf16, #tpu.memory_space<vmem>>, vector<784x256xbf16>
    %cst = arith.constant dense<0.000000e+00> : vector<8x256xf32>
    %3 = tpu.matmul %1, %2, %cst {dimension_numbers = #tpu.dot_dimension_numbers<[1], [0], [0], [1], [0, 0, 1, 1], [], []>} : vector<8x784xbf16>, vector<784x256xbf16>, vector<8x256xf32> -> vector<8x256xf32>
    %c0_3 = arith.constant 0 : index
    %c0_4 = arith.constant 0 : index
    %4 = vector.load %arg3[%c0_3, %c0_4] : memref<1x256xf32, #tpu.memory_space<vmem>>, vector<1x256xf32>
    %5 = vector.broadcast %4 : vector<1x256xf32> to vector<8x256xf32>
    %6 = arith.addf %3, %5 : vector<8x256xf32>
    %cst_5 = arith.constant 0.000000e+00 : f32
    %7 = vector.broadcast %cst_5 : f32 to vector<8x256xf32>
    %8 = arith.maximumf %6, %7 : vector<8x256xf32>
    %9 = arith.truncf %8 : vector<8x256xf32> to vector<8x256xbf16>
    %c0_6 = arith.constant 0 : index
    %c0_7 = arith.constant 0 : index
    %10 = vector.load %arg4[%c0_6, %c0_7] : memref<256x10xbf16, #tpu.memory_space<vmem>>, vector<256x10xbf16>
    %cst_8 = arith.constant dense<0.000000e+00> : vector<8x10xf32>
    %11 = tpu.matmul %9, %10, %cst_8 {dimension_numbers = #tpu.dot_dimension_numbers<[1], [0], [0], [1], [0, 0, 1, 1], [], []>} : vector<8x256xbf16>, vector<256x10xbf16>, vector<8x10xf32> -> vector<8x10xf32>
    %c0_9 = arith.constant 0 : index
    %c0_10 = arith.constant 0 : index
    %12 = vector.load %arg5[%c0_9, %c0_10] : memref<1x10xf32, #tpu.memory_space<vmem>>, vector<1x10xf32>
    %13 = vector.broadcast %12 : vector<1x10xf32> to vector<8x10xf32>
    %14 = arith.addf %11, %13 : vector<8x10xf32>
    %c0_11 = arith.constant 0 : index
    %c0_12 = arith.constant 0 : index
    %15 = vector.load %arg6[%c0_11, %c0_12] : memref<8x10xf32, #tpu.memory_space<vmem>>, vector<8x10xf32>
    tpu.vector_store %arg6[%c0_11, %c0_12], %14 {strides = array<i32>} : memref<8x10xf32, #tpu.memory_space<vmem>>, vector<8x10xf32>,
    return
  }
  func.func @transform_0(%arg0: i32) -> (i32, i32) {
    %c0_i32 = arith.constant 0 : i32
    %c0_i32_0 = arith.constant 0 : i32
    return %arg0, %c0_i32 : i32, i32
  }
  func.func @transform_1(%arg0: i32) -> (i32, i32) {
    %c0_i32 = arith.constant 0 : i32
    %c0_i32_0 = arith.constant 0 : i32
    %c0_i32_1 = arith.constant 0 : i32
    return %c0_i32, %c0_i32_0 : i32, i32
  }
  func.func @transform_2(%arg0: i32) -> (i32, i32) {
    %c0_i32 = arith.constant 0 : i32
    %c0_i32_0 = arith.constant 0 : i32
    %c0_i32_1 = arith.constant 0 : i32
    return %c0_i32, %c0_i32_0 : i32, i32
  }
  func.func @transform_3(%arg0: i32) -> (i32, i32) {
    %c0_i32 = arith.constant 0 : i32
    %c0_i32_0 = arith.constant 0 : i32
    %c0_i32_1 = arith.constant 0 : i32
    return %c0_i32, %c0_i32_0 : i32, i32
  }
  func.func @transform_4(%arg0: i32) -> (i32, i32) {
    %c0_i32 = arith.constant 0 : i32
    %c0_i32_0 = arith.constant 0 : i32
    %c0_i32_1 = arith.constant 0 : i32
    return %c0_i32, %c0_i32_0 : i32, i32
  }
  func.func @transform_5(%arg0: i32) -> (i32, i32) {
    %c0_i32 = arith.constant 0 : i32
    %c0_i32_0 = arith.constant 0 : i32
    return %arg0, %c0_i32 : i32, i32
  }
}

</mosaic_0001>

<bundles_post_ra>
// kernel: mnist_simple_mlp.1
= control target key start
LH: loop header
LB: loop body
LE: loop exit
PB: predicated region body
PF: predicated region fallthrough
CT: control target
= control target key end

     0   :  { %10 = vsyncpa [#allocation3], 0  ;;  %s1674_s18 = smov 0   ;;  %s1781_s0 = inlined_call_operand.vmem [shape: f32[16,784], index: 0, kind: input, shape index: {}]   ;;  %s1782_s1 = inlined_call_operand.hbm [shape: bf16[784,256], index: 1, kind: input, shape index: {}]   ;;  %s1783_s2 = inlined_call_operand.vmem [shape: f32[1,256], index: 2, kind: input, shape index: {}]   ;;  %s1784_s3 = inlined_call_operand.vmem [shape: bf16[256,10], index: 3, kind: input, shape index: {}]   ;;  %s1785_s4 = inlined_call_operand.vmem [shape: f32[1,10], index: 4, kind: input, shape index: {}]   ;;  %s1786_s5 = inlined_call_operand.vmem [shape: f32[16,10], index: 5, kind: output, shape index: {}]  }
   0x1 LB: > { %s1680_s19 = sadd.s32 4294967295, %s1638_s18   ;;  %p1269_p0 = scmp.ge.s32.totalorder %s1638_s18, 1  ;;  %s1638_s18 = sphi %s1674_s18, %s16_s18  }
   0x2   : > { %p157_p1 = scmp.lt.s32.totalorder %s1638_s18, 3  ;;  %s1640_s20 = smov [#allocation2]  }
   0x3   : > { %s169_s21 = sshll.u32 %s1640_s20, 4  ;;  %p1425_p3 = scmp.eq.s32.totalorder %s1680_s19, 0  ;;  %s170_s21 = int_to_ptr.vmem [resolvable:$true] %s169_s21 }
   0x4   : > { %p1684_p2 = pnand %p1269_p0, %p157_p1  ;;  %s1613_s23 = scalar_lea.vmem %s170_s21, 12544 }
   0x5   : > { %p1614_p7 = scmp.ne.s32.totalorder %s170_s21, %s1613_s23  ;;  %p1621_p10 = scmp.lt.s32.totalorder %s170_s21, %s170_s21 }
   0x6   : > { %p1421_p4 = pneg %p1684_p2  ;;  %p1622_p11 = scmp.lt.s32.totalorder %s1613_s23, %s1613_s23 }
   0x8   : > { %p1422_p5 = pnand %p1425_p3, %p1421_p4  ;;  %p1623_p12 = por %p1622_p11, %p1621_p10 }
   0xa   : > { %p1604_p6 = pneg %p1422_p5 }
   0xc   : > { %p1616_p8 = pnand %p1614_p7, %p1604_p6 }
   0xe   : > { %p1617_p9 = pneg %p1616_p8 }
  0x10   : > { %p1624_p13 = pnand %p1623_p12, %p1617_p9 }
  0x12   : > { %1627 = shalt.err (!%p1624_p13)
}
  0x13   : > { %s1641_s24 = smov 128   ;;  %s1642_s25 = smov 8  }
  0x14   : > { %1424 = dma.hbm_to_vmem [thread:$0]  (!%p1422_p5), %s1782_s1, 12544, %s170_s21, [#allocation3], %s1641_s24, %s1641_s24, %s1642_s25  }
  0x15   : > { %202 = sbr.rel (%p1684_p2) target bundleno = 560 (0x230), region = 40 }
  0x1a   : > { %1633 = dma.done.wait (%p1425_p3), [#allocation3], 12544  }
  0x1b   : > { %1635 = vsyncadd (%p1425_p3), [#allocation3], 4294954752  ;;  %v1439_v0 = vld [vmem:[#allocation2 + $0x74] ss:$8 sps:$4 sm:$0xff]   ;;  %v1441_v1 = vld [vmem:[#allocation2 + $0x70] ss:$8 sps:$4 sm:$0xff]  }
  0x1c   : > { %857 = vmatprep.subr.bf16.mxu0 %v1439_v0  ;;  %v1442_v2 = vld [vmem:[#allocation2 + $0x174] ss:$8 sps:$4 sm:$0xff]   ;;  %v1444_v3 = vld [vmem:[#allocation2 + $0x170] ss:$8 sps:$4 sm:$0xff]   ;;  %v1445_v4 = vld [vmem:[#allocation2 + $0x64] ss:$8 sps:$4 sm:$0xff]  }
  0x1d   : > { %858 = vmatpush1.bf16.msra.mxu0 %v1441_v1  ;;  %v1447_v5 = vld [vmem:[#allocation2 + $0x60] ss:$8 sps:$4 sm:$0xff]   ;;  %898 = vmatprep.subr.bf16.mxu1 %v1442_v2  ;;  %v1448_v6 = vld [vmem:[#allocation2 + $0x164] ss:$8 sps:$4 sm:$0xff]   ;;  %v1451_v8 = vld [vmem:[#allocation2 + $0x54] ss:$8 sps:$4 sm:$0xff]  }
  0x1e   : > { %899 = vmatpush1.bf16.msra.mxu1 %v1444_v3  ;;  %859 = vmatprep.subr.bf16.mxu0 %v1445_v4  ;;  %v1450_v7 = vld [vmem:[#allocation2 + $0x160] ss:$8 sps:$4 sm:$0xff]   ;;  %v1453_v9 = vld [vmem:[#allocation2 + $0x50] ss:$8 sps:$4 sm:$0xff]   ;;  %v1454_v10 = vld [vmem:[#allocation2 + $0x154] ss:$8 sps:$4 sm:$0xff]  }
  0x1f   : > { %900 = vmatprep.subr.bf16.mxu1 %v1448_v6  ;;  %v1457_v11 = vld [vmem:[#allocation2 + $0x44] ss:$8 sps:$4 sm:$0xff]   ;;  %v1456_v12 = vld [vmem:[#allocation2 + $0x150] ss:$8 sps:$4 sm:$0xff]   ;;  %v1459_v14 = vld [vmem:[#allocation2 + $0x40] ss:$8 sps:$4 sm:$0xff]  }
  0x20   : > { %v1460_v13 = vld [vmem:[#allocation2 + $0x144] ss:$8 sps:$4 sm:$0xff]   ;;  %v1463_v15 = vld [vmem:[#allocation2 + $0x34] ss:$8 sps:$4 sm:$0xff]   ;;  %v1462_v16 = vld [vmem:[#allocation2 + $0x140] ss:$8 sps:$4 sm:$0xff]  }
  0x21   : > { %860 = vmatpush1.bf16.msra.mxu0 %v1447_v5  ;;  %v1466_v17 = vld [vmem:[#allocation2 + $0x134] ss:$8 sps:$4 sm:$0xff]   ;;  %v1465_v18 = vld [vmem:[#allocation2 + $0x30] ss:$8 sps:$4 sm:$0xff]   ;;  %v1469_v19 = vld [vmem:[#allocation2 + $0x24] ss:$8 sps:$4 sm:$0xff]  }
  0x22   : > { %861 = vmatprep.subr.bf16.mxu0 %v1451_v8  ;;  %901 = vmatpush1.bf16.msra.mxu1 %v1450_v7  ;;  %v1468_v20 = vld [vmem:[#allocation2 + $0x130] ss:$8 sps:$4 sm:$0xff]   ;;  %v1472_v21 = vld [vmem:[#allocation2 + $0x124] ss:$8 sps:$4 sm:$0xff]   ;;  %v1471_v22 = vld [vmem:[#allocation2 + $0x20] ss:$8 sps:$4 sm:$0xff]  }
  0x23   : > { %902 = vmatprep.subr.bf16.mxu1 %v1454_v10  ;;  %v1475_v23 = vld [vmem:[#allocation2 + $0x14] ss:$8 sps:$4 sm:$0xff]   ;;  %v1474_v24 = vld [vmem:[#allocation2 + $0x120] ss:$8 sps:$4 sm:$0xff]   ;;  %v1477_v26 = vld [vmem:[#allocation2 + $0x10] ss:$8 sps:$4 sm:$0xff]  }
  0x24   : > { %v1478_v25 = vld [vmem:[#allocation2 + $0x114] ss:$8 sps:$4 sm:$0xff]   ;;  %v1481_v27 = vld [vmem:[#allocation2 + $0x4] ss:$8 sps:$4 sm:$0xff]   ;;  %v1480_v28 = vld [vmem:[#allocation2 + $0x110] ss:$8 sps:$4 sm:$0xff]  }
  0x25   : > { %862 = vmatpush1.bf16.msra.mxu0 %v1453_v9  ;;  %v1484_v29 = vld [vmem:[#allocation2 + $0x104] ss:$8 sps:$4 sm:$0xff]   ;;  %v1483_v30 = vld [vmem:[#allocation2] ss:$8 sps:$4 sm:$0xff]   ;;  %p229_p0 = scmp.lt.s32.totalorder %s1680_s19, 1  ;;  %vm853_vm0 = vcmask 130048  }
  0x26   : > { %863 = vmatprep.subr.bf16.mxu0 %v1457_v11  ;;  %903 = vmatpush1.bf16.msra.mxu1 %v1456_v12  ;;  %v1487_v31 = vld [vmem:[#allocation2 + $0xf4] ss:$8 sps:$4 sm:$0xff]   ;;  %v1486_v32 = vld [vmem:[#allocation2 + $0x100] ss:$8 sps:$4 sm:$0xff]   ;;  %v1489_v34 = vld [vmem:[#allocation2 + $0xf0] ss:$8 sps:$4 sm:$0xff]  }
  0x27   : > { %904 = vmatprep.subr.bf16.mxu1 %v1460_v13  ;;  %v1490_v33 = vld [vmem:[#allocation2 + $0x1f4] ss:$8 sps:$4 sm:$0xff]   ;;  %s1789_s19 = smov (!%p229_p0, %s1680_s19), 1  ;;  %v1493_v35 = vld [vmem:[#allocation2 + $0xe4] ss:$8 sps:$4 sm:$0xff]   ;;  %vm1200_vm1 = vcmask 80896  }
  0x28   : > { %v1492_v36 = vld [vmem:[#allocation2 + $0x1f0] ss:$8 sps:$4 sm:$0xff]   ;;  %v1496_v37 = vld [vmem:[#allocation2 + $0x1e4] ss:$8 sps:$4 sm:$0xff]   ;;  %v1495_v38 = vld [vmem:[#allocation2 + $0xe0] ss:$8 sps:$4 sm:$0xff]  }
  0x29   : > { %864 = vmatpush1.bf16.msra.mxu0 %v1459_v14  ;;  %s1416_s28 = smul.u32 56, %s1789_s19  ;;  %v1499_v39 = vld [vmem:[#allocation2 + $0xd4] ss:$8 sps:$4 sm:$0xff]   ;;  %v1498_v40 = vld [vmem:[#allocation2 + $0x1e0] ss:$8 sps:$4 sm:$0xff]   ;;  %s1275_s20 = sshll.u32 %s1789_s19, 3 }
  0x2a   : > { %865 = vmatprep.subr.bf16.mxu0 %v1463_v15  ;;  %905 = vmatpush1.bf16.msra.mxu1 %v1462_v16  ;;  %v1502_v41 = vld [vmem:[#allocation2 + $0x1d4] ss:$8 sps:$4 sm:$0xff]   ;;  %v1501_v42 = vld [vmem:[#allocation2 + $0xd0] ss:$8 sps:$4 sm:$0xff]   ;;  %v1505_v43 = vld [vmem:[#allocation2 + $0xc4] ss:$8 sps:$4 sm:$0xff]   ;;  %s237_s25 = scalar_lea.vmem %s1786_s5, %s1275_s20 }
  0x2b   : > { %906 = vmatprep.subr.bf16.mxu1 %v1466_v17  ;;  %s1710_s6 = scalar_lea.vmem %s1781_s0, %s1416_s28  ;;  %v1504_v44 = vld [vmem:[#allocation2 + $0x1d0] ss:$8 sps:$4 sm:$0xff]   ;;  %v1508_v45 = vld [vmem:[#allocation2 + $0x1c4] ss:$8 sps:$4 sm:$0xff]   ;;  %v1507_v47 = vld [vmem:[#allocation2 + $0xc0] ss:$8 sps:$4 sm:$0xff]  }
  0x2c   : > { %v240_v46 = vld [vmem:[%s1710_s6 + $0x8] sm:$0xff]  ;;  %v1511_v49 = vld [vmem:[#allocation2 + $0xb4] ss:$8 sps:$4 sm:$0xff]   ;;  %v1513_v54 = vld [vmem:[#allocation2 + $0xb0] ss:$8 sps:$4 sm:$0xff]  }
  0x2d   : > { %866 = vmatpush1.bf16.msra.mxu0 %v1465_v18  ;;  %v247_v48 = vpack.c.bf16 %v240_v46, %v240_v46  ;;  %v242_v50 = vld [vmem:[%s1710_s6 + $0x18] sm:$0xff]  ;;  %v1510_v51 = vld [vmem:[#allocation2 + $0x1c0] ss:$8 sps:$4 sm:$0xff]   ;;  %v1517_v55 = vld [vmem:[#allocation2 + $0xa4] ss:$8 sps:$4 sm:$0xff]  }
  0x2e   : > { %867 = vmatprep.subr.bf16.mxu0 %v1469_v19  ;;  %907 = vmatpush1.bf16.msra.mxu1 %v1468_v20  ;;  %v249_v52 = vpack.c.bf16 %v242_v50, %v242_v50  ;;  %v1514_v53 = vld [vmem:[#allocation2 + $0x1b4] ss:$8 sps:$4 sm:$0xff]   ;;  %v1516_v56 = vld [vmem:[#allocation2 + $0x1b0] ss:$8 sps:$4 sm:$0xff]   ;;  %v1520_v57 = vld [vmem:[#allocation2 + $0x1a4] ss:$8 sps:$4 sm:$0xff]  }
  0x2f   : > { %908 = vmatprep.subr.bf16.mxu1 %v1472_v21  ;;  %889 = vmatprep.mubr.bf16.mxu0 %v247_v48  ;;  %v1519_v58 = vld [vmem:[#allocation2 + $0xa0] ss:$8 sps:$4 sm:$0xff]   ;;  %v1523_v59 = vld [vmem:[#allocation2 + $0x94] ss:$8 sps:$4 sm:$0xff]   ;;  %v1525_v62 = vld [vmem:[#allocation2 + $0x90] ss:$8 sps:$4 sm:$0xff]  }
  0x30   : > { %930 = vmatprep.mubr.bf16.mxu1 %v249_v52  ;;  %v1522_v60 = vld [vmem:[#allocation2 + $0x1a0] ss:$8 sps:$4 sm:$0xff]   ;;  %v1526_v61 = vld [vmem:[#allocation2 + $0x194] ss:$8 sps:$4 sm:$0xff]   ;;  %v1529_v63 = vld [vmem:[#allocation2 + $0x84] ss:$8 sps:$4 sm:$0xff]  }
  0x31   : > { %868 = vmatpush1.bf16.msra.mxu0 %v1471_v22  ;;  %v1528_v0 = vld [vmem:[#allocation2 + $0x190] ss:$8 sps:$4 sm:$0xff]   ;;  %v1531_v1 = vld [vmem:[#allocation2 + $0x80] ss:$8 sps:$4 sm:$0xff]   ;;  %v1532_v2 = vld [vmem:[#allocation2 + $0x184] ss:$8 sps:$4 sm:$0xff]  }
  0x32   : > { %869 = vmatprep.subr.bf16.mxu0 %v1475_v23  ;;  %909 = vmatpush1.bf16.msra.mxu1 %v1474_v24  ;;  %v1534_v3 = vld [vmem:[#allocation2 + $0x180] ss:$8 sps:$4 sm:$0xff]   ;;  %v1537_v5 = vld [vmem:[#allocation2 + $0x274] ss:$8 sps:$4 sm:$0xff]   ;;  %v1535_v8 = vld [vmem:[#allocation2 + $0x270] ss:$8 sps:$4 sm:$0xff]  }
  0x33   : > { %910 = vmatprep.subr.bf16.mxu1 %v1478_v25  ;;  %v239_v4 = vld [vmem:[%s1710_s6] sm:$0xff]  ;;  %v241_v6 = vld [vmem:[%s1710_s6 + $0x10] sm:$0xff]  ;;  %v244_v16 = vld [vmem:[%s1710_s6 + $0x28] sm:$0xff]  ;;  %v1643_v19 = vmov 0  }
  0x34   : > { %v246_v7 = vpack.c.bf16 %v239_v4, %v239_v4  ;;  %v1540_v9 = vld [vmem:[#allocation2 + $0x264] ss:$8 sps:$4 sm:$0xff]   ;;  %v248_v10 = vpack.c.bf16 %v241_v6, %v241_v6  ;;  %v1580_v11 = vld [vmem:[#allocation2 + $0x300] ss:$8 sps:$4 sm:$0xff]   ;;  %v1543_v14 = vld [vmem:[#allocation2 + $0x254] ss:$8 sps:$4 sm:$0xff]   ;;  %v251_v17 = vpack.c.bf16 %v244_v16, %v244_v16 }
  0x35   : > { %870 = vmatpush1.bf16.msra.mxu0 %v1477_v26  ;;  %v1582_v12 = vld [vmem:[#allocation2 + $0x304] ss:$8 sps:$4 sm:$0xff]   ;;  %v1538_v13 = vld [vmem:[#allocation2 + $0x260] ss:$8 sps:$4 sm:$0xff]   ;;  %v245_v15 = vld [vmem:[%s1710_s6 + $0x30] sm:$0xff] }
  0x36   : > { %871 = vmatprep.subr.bf16.mxu0 %v1481_v27  ;;  %911 = vmatpush1.bf16.msra.mxu1 %v1480_v28  ;;  %v1541_v18 = vld [vmem:[#allocation2 + $0x250] ss:$8 sps:$4 sm:$0xff]   ;;  %v1546_v20 = vld [vmem:[#allocation2 + $0x244] ss:$8 sps:$4 sm:$0xff]   ;;  %v252_v21 = vpack.c.bf16 %v245_v15, %v245_v15  ;;  %v1544_v22 = vld [vmem:[#allocation2 + $0x240] ss:$8 sps:$4 sm:$0xff]  }
  0x37   : > { %912 = vmatprep.subr.bf16.mxu1 %v1484_v29  ;;  %v1549_v23 = vld [vmem:[#allocation2 + $0x234] ss:$8 sps:$4 sm:$0xff]   ;;  %v1547_v24 = vld [vmem:[#allocation2 + $0x230] ss:$8 sps:$4 sm:$0xff]   ;;  %v1552_v25 = vld [vmem:[#allocation2 + $0x224] ss:$8 sps:$4 sm:$0xff]  }
  0x38   : > { %v1550_v26 = vld [vmem:[#allocation2 + $0x220] ss:$8 sps:$4 sm:$0xff]   ;;  %v1555_v27 = vld [vmem:[#allocation2 + $0x214] ss:$8 sps:$4 sm:$0xff]   ;;  %v1553_v28 = vld [vmem:[#allocation2 + $0x210] ss:$8 sps:$4 sm:$0xff]  }
  0x39   : > { %872 = vmatpush1.bf16.msra.mxu0 %v1483_v30  ;;  %v1558_v29 = vld [vmem:[#allocation2 + $0x204] ss:$8 sps:$4 sm:$0xff]   ;;  %v1556_v30 = vld [vmem:[#allocation2 + $0x200] ss:$8 sps:$4 sm:$0xff]   ;;  %v1587_v50 = vld [vmem:[%s1784_s3 + $0x38] sm:$0xff]  }
  0x3a   : > { %873 = vmatprep.subr.bf16.mxu0 %v1487_v31  ;;  %913 = vmatpush1.bf16.msra.mxu1 %v1486_v32  ;;  %v1561_v31 = vld [vmem:[#allocation2 + $0x2f4] ss:$8 sps:$4 sm:$0xff]   ;;  %v1559_v32 = vld [vmem:[#allocation2 + $0x2f0] ss:$8 sps:$4 sm:$0xff]   ;;  %v1583_v46 = vld [vmem:[#allocation2 + $0x280] ss:$8 sps:$4 sm:$0xff]  }
  0x3b   : > { %914 = vmatprep.subr.bf16.mxu1 %v1490_v33  ;;  %v1564_v33 = vld [vmem:[#allocation2 + $0x2e4] ss:$8 sps:$4 sm:$0xff]   ;;  %v1589_v52 = vld [vmem:[%s1784_s3 + $0x30] sm:$0xff]   ;;  %v351_v16 = vld [vmem:[%s1783_s2] sm:$0x3] }
  0x3d   : > { %874 = vmatpush2.bf16.msra.mxu0 %v1489_v34  ;;  %v1562_v34 = vld [vmem:[#allocation2 + $0x2e0] ss:$8 sps:$4 sm:$0xff]  }
  0x3e   : > { %875 = vmatprep.subr.bf16.mxu0 %v1493_v35  ;;  %915 = vmatpush2.bf16.msra.mxu1 %v1492_v36  ;;  %v1567_v35 = vld [vmem:[#allocation2 + $0x2d4] ss:$8 sps:$4 sm:$0xff]   ;;  %v1565_v36 = vld [vmem:[#allocation2 + $0x2d0] ss:$8 sps:$4 sm:$0xff]  }
  0x3f   : > { %916 = vmatprep.subr.bf16.mxu1 %v1496_v37  ;;  %v1570_v37 = vld [vmem:[#allocation2 + $0x2c4] ss:$8 sps:$4 sm:$0xff]  }
  0x41   : > { %876 = vmatpush2.bf16.msra.mxu0 %v1495_v38  ;;  %v1568_v38 = vld [vmem:[#allocation2 + $0x2c0] ss:$8 sps:$4 sm:$0xff]  }
  0x42   : > { %877 = vmatprep.subr.bf16.mxu0 %v1499_v39  ;;  %917 = vmatpush2.bf16.msra.mxu1 %v1498_v40  ;;  %v1573_v39 = vld [vmem:[#allocation2 + $0x2b4] ss:$8 sps:$4 sm:$0xff]   ;;  %v1571_v40 = vld [vmem:[#allocation2 + $0x2b0] ss:$8 sps:$4 sm:$0xff]  }
  0x43   : > { %918 = vmatprep.subr.bf16.mxu1 %v1502_v41  ;;  %v1576_v41 = vld [vmem:[#allocation2 + $0x2a4] ss:$8 sps:$4 sm:$0xff]  }
  0x45   : > { %878 = vmatpush2.bf16.msra.mxu0 %v1501_v42  ;;  %v1574_v42 = vld [vmem:[#allocation2 + $0x2a0] ss:$8 sps:$4 sm:$0xff]  }
  0x46   : > { %879 = vmatprep.subr.bf16.mxu0 %v1505_v43  ;;  %919 = vmatpush2.bf16.msra.mxu1 %v1504_v44  ;;  %v1579_v43 = vld [vmem:[#allocation2 + $0x294] ss:$8 sps:$4 sm:$0xff]   ;;  %v1577_v44 = vld [vmem:[#allocation2 + $0x290] ss:$8 sps:$4 sm:$0xff]  }
  0x47   : > { %920 = vmatprep.subr.bf16.mxu1 %v1508_v45  ;;  %v1585_v45 = vld [vmem:[#allocation2 + $0x284] ss:$8 sps:$4 sm:$0xff]  }
  0x49   : > { %880 = vmatpush2.bf16.msra.mxu0 %v1507_v47  ;;  %v243_v47 = vld [vmem:[%s1710_s6 + $0x20] sm:$0xff] }
  0x4a   : > { %881 = vmatprep.subr.bf16.mxu0 %v1511_v49  ;;  %921 = vmatpush2.bf16.msra.mxu1 %v1510_v51  ;;  %v250_v48 = vpack.c.bf16 %v243_v47, %v243_v47  ;;  %v1586_v49 = vld [vmem:[%s1784_s3 + $0x78] sm:$0xff]   ;;  %v1588_v51 = vld [vmem:[%s1784_s3 + $0x70] sm:$0xff]  }
  0x4b   : > { %922 = vmatprep.subr.bf16.mxu1 %v1514_v53  ;;  %v1590_v53 = vld [vmem:[%s1784_s3 + $0x68] sm:$0xff]  }
  0x4d   : > { %882 = vmatpush2.bf16.msra.mxu0 %v1513_v54  ;;  %v1591_v54 = vld [vmem:[%s1784_s3 + $0x28] sm:$0xff]  }
  0x4e   : > { %883 = vmatprep.subr.bf16.mxu0 %v1517_v55  ;;  %923 = vmatpush2.bf16.msra.mxu1 %v1516_v56  ;;  %v1592_v55 = vld [vmem:[%s1784_s3 + $0x60] sm:$0xff]  }
  0x4f   : > { %924 = vmatprep.subr.bf16.mxu1 %v1520_v57  ;;  %v1593_v56 = vld [vmem:[%s1784_s3 + $0x20] sm:$0xff]   ;;  %v1594_v57 = vld [vmem:[%s1784_s3 + $0x58] sm:$0xff]  }
  0x51   : > { %884 = vmatpush2.bf16.msra.mxu0 %v1519_v58  ;;  %v1595_v58 = vld [vmem:[%s1784_s3 + $0x18] sm:$0xff]  }
  0x52   : > { %885 = vmatprep.subr.bf16.mxu0 %v1523_v59  ;;  %925 = vmatpush2.bf16.msra.mxu1 %v1522_v60  ;;  %v1596_v59 = vld [vmem:[%s1784_s3 + $0x50] sm:$0xff]  }
  0x53   : > { %926 = vmatprep.subr.bf16.mxu1 %v1526_v61  ;;  %v1597_v60 = vld [vmem:[%s1784_s3 + $0x10] sm:$0xff]   ;;  %v1598_v61 = vld [vmem:[%s1784_s3 + $0x48] sm:$0xff]  }
  0x55   : > { %886 = vmatpush2.bf16.msra.mxu0 %v1525_v62  ;;  %v1599_v62 = vld [vmem:[%s1784_s3 + $0x8] sm:$0xff]  }
  0x56   : > { %887 = vmatprep.subr.bf16.mxu0 %v1529_v63  ;;  %927 = vmatpush2.bf16.msra.mxu1 %v1528_v0  ;;  %v1600_v63 = vld [vmem:[%s1784_s3 + $0x40] sm:$0xff]  }
  0x57   : > { %928 = vmatprep.subr.bf16.mxu1 %v1532_v2  ;;  %v1601_v0 = vld [vmem:[%s1784_s3] sm:$0xff]  }
  0x59   : > { %888 = vmatpush2.bf16.msra.mxu0 %v1531_v1 }
  0x5a   : > { %939 = vmatprep.subr.bf16.mxu0 %v1537_v5  ;;  %929 = vmatpush2.bf16.msra.mxu1 %v1534_v3 }
  0x5b   : > { %994 = vmatprep.subr.bf16.mxu1 %v1582_v12 }
  0x5c   : > { %890 = vmatmul.mubr.bf16.vlgmr.msra.gmra.mxu0 %v246_v7 }
  0x5d   : > { %940 = vmatpush1.bf16.msra.mxu0 %v1535_v8  ;;  %931 = vmatmul.mubr.bf16.vlgmr.msra.gmra.mxu1 %v248_v10 }
  0x5e   : > { %941 = vmatprep.subr.bf16.mxu0 %v1540_v9  ;;  %995 = vmatpush1.bf16.msra.mxu1 %v1580_v11 }
  0x5f   : > { %1012 = vmatprep.mubr.bf16.mxu1 %v1643_v19  ;;  %971 = vmatprep.mubr.bf16.mxu0 %v251_v17 }
  0x60   : > { %1394 = vmatprep.subr.bf16.mxu1 %v1586_v49 }
  0x61   : > { %942 = vmatpush1.bf16.msra.mxu0 %v1538_v13  ;;  %v353_v13 = vlaneseq }
  0x62   : > { %943 = vmatprep.subr.bf16.mxu0 %v1543_v14 }
  0x63   : > { %v354_v14 = vshrl.u32 %v353_v13, 7 }
  0x65   : > { %944 = vmatpush1.bf16.msra.mxu0 %v1541_v18  ;;  %1374 = vmatmul.mubr.msk.bf16.vlgmr.msra.gmra.mxu1 %vm853_vm0, %v252_v21  ;;  %v355_v15 = vsub.s32 0, %v354_v14  ;;  %v359_v17 = vsub.s32 1, %v354_v14 }
  0x66   : > { %945 = vmatprep.subr.bf16.mxu0 %v1546_v20  ;;  %1395 = vmatpush3.bf16.msra.mxu1 %v1587_v50 }
  0x67   : > { %1396 = vmatprep.subr.bf16.mxu1 %v1588_v51  ;;  %v356_v18 = vrot.slane %v351_v16, %v355_v15  ;;  %v360_v19 = vrot.slane %v351_v16, %v359_v17 }
  0x69   : > { %946 = vmatpush1.bf16.msra.mxu0 %v1544_v22 }
  0x6a   : > { %947 = vmatprep.subr.bf16.mxu0 %v1549_v23  ;;  %1397 = vmatpush3.bf16.msra.mxu1 %v1589_v52 }
  0x6b   : > { %1398 = vmatprep.subr.bf16.mxu1 %v1590_v53 }
  0x6d   : > { %948 = vmatpush1.bf16.msra.mxu0 %v1547_v24 }
  0x6e   : > { %949 = vmatprep.subr.bf16.mxu0 %v1552_v25  ;;  %1399 = vmatpush3.bf16.msra.mxu1 %v1591_v54 }
  0x6f   : > { %1400 = vmatprep.subr.bf16.mxu1 %v1592_v55 }
  0x71   : > { %950 = vmatpush1.bf16.msra.mxu0 %v1550_v26 }
  0x72   : > { %951 = vmatprep.subr.bf16.mxu0 %v1555_v27  ;;  %1401 = vmatpush3.bf16.msra.mxu1 %v1593_v56 }
  0x73   : > { %1402 = vmatprep.subr.bf16.mxu1 %v1594_v57 }
  0x75   : > { %952 = vmatpush1.bf16.msra.mxu0 %v1553_v28 }
  0x76   : > { %953 = vmatprep.subr.bf16.mxu0 %v1558_v29  ;;  %1403 = vmatpush3.bf16.msra.mxu1 %v1595_v58 }
  0x77   : > { %1404 = vmatprep.subr.bf16.mxu1 %v1596_v59 }
  0x79   : > { %954 = vmatpush1.bf16.msra.mxu0 %v1556_v30 }
  0x7a   : > { %955 = vmatprep.subr.bf16.mxu0 %v1561_v31  ;;  %1405 = vmatpush3.bf16.msra.mxu1 %v1597_v60 }
  0x7b   : > { %1406 = vmatprep.subr.bf16.mxu1 %v1598_v61 }
  0x7d   : > { %956 = vmatpush2.bf16.msra.mxu0 %v1559_v32 }
  0x7e   : > { %957 = vmatprep.subr.bf16.mxu0 %v1564_v33  ;;  %1407 = vmatpush3.bf16.msra.mxu1 %v1599_v62 }
  0x7f   : > { %1408 = vmatprep.subr.bf16.mxu1 %v1600_v63 }
  0x81   : > { %958 = vmatpush2.bf16.msra.mxu0 %v1562_v34 }
  0x82   : > { %959 = vmatprep.subr.bf16.mxu0 %v1567_v35  ;;  %1409 = vmatpush3.bf16.msra.mxu1 %v1601_v0 }
  0x85   : > { %960 = vmatpush2.bf16.msra.mxu0 %v1565_v36 }
  0x86   : > { %961 = vmatprep.subr.bf16.mxu0 %v1570_v37  ;;  %v1375_v37 = vld [vmem:[%s1785_s4] ss:$0 sm:$0xff] }
  0x89   : > { %962 = vmatpush2.bf16.msra.mxu0 %v1568_v38 }
  0x8a   : > { %963 = vmatprep.subr.bf16.mxu0 %v1573_v39 }
  0x8d   : > { %964 = vmatpush2.bf16.msra.mxu0 %v1571_v40 }
  0x8e   : > { %965 = vmatprep.subr.bf16.mxu0 %v1576_v41 }
  0x91   : > { %966 = vmatpush2.bf16.msra.mxu0 %v1574_v42 }
  0x92   : > { %967 = vmatprep.subr.bf16.mxu0 %v1579_v43 }
  0x95   : > { %968 = vmatpush2.bf16.msra.mxu0 %v1577_v44 }
  0x96   : > { %969 = vmatprep.subr.bf16.mxu0 %v1585_v45 }
  0x99   : > { %970 = vmatpush2.bf16.msra.mxu0 %v1583_v46 }
  0x9c   : > { %972 = vmatmul.mubr.bf16.vlgmr.msra.gmra.mxu0 %v250_v48 }
 0x11c   : > { %v891_v1 = vpop.f32.mrf.mxu0 }
 0x11d   : > { %v932_v3 = vpop.f32.mrf.mxu1  ;;  %v892_v20 = vadd.f32 %v891_v1, %v356_v18 }
 0x11e   : > { %v893_v2 = vpop.f32.mrf.mxu0 }
 0x11f   : > { %v934_v5 = vpop.f32.mrf.mxu1  ;;  %v894_v21 = vadd.f32 %v893_v2, %v360_v19  ;;  %v933_v22 = vadd.f32 %v932_v3, %v892_v20 }
 0x120   : > { %v895_v4 = vpop.f32.mrf.mxu0 }
 0x121   : > { %v936_v7 = vpop.f32.mrf.mxu1  ;;  %v935_v24 = vadd.f32 %v934_v5, %v894_v21 }
 0x122   : > { %v896_v6 = vpop.f32.mrf.mxu0 }
 0x123   : > { %v937_v8 = vpop.f32.mrf.mxu1 }
 0x125   : > { %v1014_v9 = vpop.f32.mrf.mxu1 }
 0x127   : > { %v1016_v10 = vpop.f32.mrf.mxu1 }
 0x129   : > { %v1018_v11 = vpop.f32.mrf.mxu1 }
 0x12b   : > { %v1019_v12 = vpop.f32.mrf.mxu1 }
 0x15c   : > { %v973_v23 = vpop.f32.mrf.mxu0 }
 0x15d   : > { %v974_v25 = vadd.f32 %v973_v23, %v933_v22 }
 0x15e   : > { %v975_v26 = vpop.f32.mrf.mxu0 }
 0x15f   : > { %v1015_v27 = vadd.f32 %v1014_v9, %v974_v25  ;;  %v976_v28 = vadd.f32 %v975_v26, %v935_v24 }
 0x160   : > { %v977_v29 = vpop.f32.mrf.mxu0 }
 0x161   : > { %v1017_v30 = vadd.f32 %v1016_v10, %v976_v28  ;;  %v1021_v31 = vmax.f32 %v1015_v27, 0.0 }
 0x162   : > { %v978_v32 = vpop.f32.mrf.mxu0 }
 0x163   : > { %v1022_v33 = vmax.f32 %v1017_v30, 0.0  ;;  %v1023_v35 = vpack.c.bf16 %v1021_v31, %v1021_v31 }
 0x165   : > { %v1024_v34 = vpack.c.bf16 %v1022_v33, %v1022_v33 }
 0x167   : > { %1192 = vmatprep.mubr.bf16.mxu1 %v1024_v34 }
 0x168   : > { %1193 = vmatmul.mubr.bf16.vlgmr.msra.gmra.mxu1 %v1023_v35 }
 0x228   : > { %v1410_v36 = vpop.f32.mrf.mxu1 }
 0x22a   : > { %v1411_v38 = vpop.f32.mrf.mxu1 }
 0x22b   : > { %v1412_v39 = vadd.f32 %v1411_v38, %v1410_v36 }
 0x22c   : > { %v1413_v40 = vpop.f32.mrf.mxu1 }
 0x22d   : > { %v1195_v41 = vadd.f32 %v1412_v39, %v1375_v37 }
 0x22e   : > { %v1414_v42 = vpop.f32.mrf.mxu1 }
 0x22f   : > { %1201 = vst.msk [vmem:[%s237_s25] sm:$0xff] %vm1200_vm1, %v1195_v41 }
 0x230 PF: > { %s16_s18 = sadd.s32 1, %s1638_s18  }
 0x231   : > { %p13_p1 = scmp.ge.s32.totalorder %s16_s18, 4  }
 0x233   :  { %15 = sbr.rel (!%p13_p1) target bundleno = 1 (0x1), region = 75 }
 0x238   :  { %1221 = vsyncpa [#allocation3], 1 }
 0x239   :  { %1223 = vsyncpa [#allocation3 + $0x1], 1 }

</bundles_post_ra>
